<compile_context>
chip_gen: v7x
topology: tpu7x:2x2x1
jax: 0.10.0
libtpu: 0.0.40
codegen_flags: <defaults>
</compile_context>

<pallas_src>
import jax
import jax.numpy as jnp
from jax.experimental import pallas as pl
from jax.experimental.pallas import tpu as pltpu


def _make_ce_kernel(n_total: int, tile_n: int, num_tiles: int,
                    use_mxu_reduce: bool):
    """Builds the kernel with all static configuration baked in."""
    has_pad = (num_tiles * tile_n) != n_total

    def kernel(logits_ref, labels_ref, out_ref):
        # logits_ref: (tile_n, C) in VMEM (native dtype)
        # labels_ref: (tile_n, 1) int32 in VMEM
        # out_ref:    (1, 8, 128) f32 per-tile partial-sum block (lane dense)
        i = pl.program_id(0)

        x = logits_ref[...]                    # (tn, C) native dtype
        labels = labels_ref[...]               # (tn, 1) int32
        tn, c = x.shape

        # Widen once after load; everything below is f32 (avoids bf16 VALU /
        # pack-unpack churn on v5e, DMA still moved the narrow bytes).
        xf = x.astype(jnp.float32)

        # Numerically stable shifted logits.  Row max stays on the XLU.
        m = jnp.max(xf, axis=-1, keepdims=True)            # (tn, 1)
        d = xf - m                                          # (tn, C) VPU
        ex = jnp.exp(d)                                     # (tn, C) EUP

        # Target gather with a compare/select against a (1, C) iota (no full
        # (tn, C) iota materialization).  Note the row-max cancels:
        #   lse - x[y] = log(sum exp(d)) - d[y]
        col = jax.lax.broadcasted_iota(jnp.int32, (1, c), 1)      # (1, C)
        masked_d = jnp.where(col == labels, d, jnp.float32(0.0))  # (tn, C)

        if use_mxu_reduce:
            # Lane sums on the idle MXU (1 vmatmul push per LHS vreg) instead
            # of ~7 XLU pushes per vreg.  C is a multiple of 128 here.
            ones_c = jnp.ones((c, 1), jnp.float32)
            sum_ex = jnp.dot(ex, ones_c, preferred_element_type=jnp.float32)
            tgt = jnp.dot(masked_d, ones_c, preferred_element_type=jnp.float32)
        else:
            # Unaligned C: let Mosaic's masked XLU reduction handle the
            # padded lanes safely.
            sum_ex = jnp.sum(ex, axis=-1, keepdims=True)           # (tn, 1)
            tgt = jnp.sum(masked_d, axis=-1, keepdims=True)        # (tn, 1)

        # Short lane-sparse tail: one EUP log, one sub, one reduce.
        per_row = jnp.log(sum_ex) - tgt                            # (tn, 1)
        tile_sum = jnp.sum(per_row)

        # Lane-dense partial-sum block; wrapper reads element [0, 0].
        out_ref[...] = jnp.full((1, 8, 128), tile_sum, jnp.float32)

        if has_pad:
            # Only the ragged last tile pays for the padding mask.
            @pl.when(i == num_tiles - 1)
            def _mask_pad_rows():
                row = (jax.lax.broadcasted_iota(jnp.int32, (tn, 1), 0)
                       + i * tile_n)
                masked_sum = jnp.sum(
                    jnp.where(row < n_total, per_row, jnp.float32(0.0)))
                out_ref[...] = jnp.full((1, 8, 128), masked_sum, jnp.float32)

    return kernel


def _pick_tile_n(n: int, c: int, itemsize: int) -> int:
    """Row-tile size targeting ~4 MiB of logits per tile.  With 2x input
    double-buffering plus ~3 full-tile f32 temps this stays well inside the
    48 MiB VMEM limit we request (v7x physical VMEM is 64 MiB)."""
    sub = 8 if itemsize >= 4 else (16 if itemsize == 2 else 32)
    target_bytes = 4 * 1024 * 1024
    tile = max(sub, (target_bytes // max(1, c * itemsize)) // sub * sub)
    n_min_pad = ((n + sub - 1) // sub) * sub
    return min(tile, n_min_pad)


def cross_entropy_loss(pred, labels, tile_n=None):
    """pred: (N, C) float logits, labels: (N,) int class indices -> scalar f32."""
    n, c = pred.shape
    itemsize = jnp.dtype(pred.dtype).itemsize
    sub = 8 if itemsize >= 4 else (16 if itemsize == 2 else 32)

    if tile_n is None:
        tile_n = _pick_tile_n(n, c, itemsize)
    else:
        tile_n = max(sub, ((tile_n + sub - 1) // sub) * sub)
        tile_n = min(tile_n, ((n + sub - 1) // sub) * sub)

    num_tiles = (n + tile_n - 1) // tile_n
    n_pad = num_tiles * tile_n

    logits = pred
    labels2d = labels.astype(jnp.int32).reshape(n, 1)
    if n_pad != n:
        logits = jnp.pad(logits, ((0, n_pad - n), (0, 0)))
        labels2d = jnp.pad(labels2d, ((0, n_pad - n), (0, 0)))

    use_mxu_reduce = (c % 128 == 0)
    kernel = _make_ce_kernel(n, tile_n, num_tiles, use_mxu_reduce)

    cost = pl.CostEstimate(
        flops=8 * n * c,                 # widen/sub/cmp/select + 2 ones-dots
        transcendentals=n * c + n,       # exp per element + log per row
        bytes_accessed=n * c * itemsize + n * 4 + num_tiles * 8 * 128 * 4,
    )

    partials = pl.pallas_call(
        kernel,
        out_shape=jax.ShapeDtypeStruct((num_tiles, 8, 128), jnp.float32),
        grid=(num_tiles,),
        in_specs=[
            pl.BlockSpec((tile_n, c), lambda i: (i, 0)),   # logits tile
            pl.BlockSpec((tile_n, 1), lambda i: (i, 0)),   # labels tile
        ],
        out_specs=pl.BlockSpec((1, 8, 128), lambda i: (i, 0, 0)),
        compiler_params=pltpu.CompilerParams(
            # Per-tile independent partial sums -> row axis is parallel
            # (megacore sharding on v7x, no-op on v5e/v6e single TC).
            dimension_semantics=("parallel",),
            vmem_limit_bytes=48 * 1024 * 1024,
        ),
        cost_estimate=cost,
    )(logits, labels2d)

    # Tiny final reduction + mean over the *global* batch size in the wrapper.
    return jnp.sum(partials[:, 0, 0]) * (1.0 / float(n))


def _reference(pred, labels):
    # pure-JAX reference for sanity checking (f32)
    lse = jax.nn.logsumexp(pred.astype(jnp.float32), axis=-1)
    tgt = jnp.take_along_axis(
        pred.astype(jnp.float32), labels[:, None].astype(jnp.int32), axis=-1
    )[:, 0]
    return jnp.mean(lse - tgt)


if __name__ == "__main__":
    key = jax.random.PRNGKey(0)
    k1, k2, k3, k4, k5, k6, k7, k8 = jax.random.split(key, 8)

    # Case 1: small, single-tile, lane-aligned class count (MXU-reduce path).
    N1, C1 = 8, 128
    pred1 = jax.random.normal(k1, (N1, C1), dtype=jnp.float32)
    lab1 = jax.random.randint(k2, (N1,), 0, C1, dtype=jnp.int32)
    loss1 = cross_entropy_loss(pred1, lab1)
    jax.block_until_ready(loss1)
    ref1 = _reference(pred1, lab1)
    assert jnp.allclose(loss1, ref1, rtol=1e-5, atol=1e-5), (loss1, ref1)

    # Case 2: multi-tile parallel grid with a ragged last tile (padded rows
    # masked under pl.when on the last tile only; mean over the global N).
    N2, C2 = 37, 256
    pred2 = jax.random.normal(k3, (N2, C2), dtype=jnp.float32)
    lab2 = jax.random.randint(k4, (N2,), 0, C2, dtype=jnp.int32)
    loss2 = cross_entropy_loss(pred2, lab2, tile_n=16)
    jax.block_until_ready(loss2)
    ref2 = _reference(pred2, lab2)
    assert jnp.allclose(loss2, ref2, rtol=1e-5, atol=1e-5), (loss2, ref2)

    # Case 3: class count NOT a multiple of 128 (falls back to masked XLU
    # reductions so lane padding cannot leak into the sums).
    N3, C3 = 24, 100
    pred3 = jax.random.normal(k5, (N3, C3), dtype=jnp.float32)
    lab3 = jax.random.randint(k6, (N3,), 0, C3, dtype=jnp.int32)
    loss3 = cross_entropy_loss(pred3, lab3)
    jax.block_until_ready(loss3)
    ref3 = _reference(pred3, lab3)
    assert jnp.allclose(loss3, ref3, rtol=1e-5, atol=1e-5), (loss3, ref3)

    # Case 4: bf16 logits (widened to f32 once inside the kernel).
    N4, C4 = 16, 128
    pred4 = jax.random.normal(k7, (N4, C4), dtype=jnp.float32).astype(jnp.bfloat16)
    lab4 = jax.random.randint(k8, (N4,), 0, C4, dtype=jnp.int32)
    loss4 = cross_entropy_loss(pred4, lab4)
    jax.block_until_ready(loss4)
    ref4 = _reference(pred4, lab4)
    assert jnp.allclose(loss4, ref4, rtol=1e-4, atol=1e-4), (loss4, ref4)

    print("KERNEL_OK")
</pallas_src>

<mosaic_0001>
module attributes {stable_mosaic.version = 11 : i64} {
  func.func @kernel(%arg0: i32, %arg1: memref<8x128xf32, #tpu.memory_space<vmem>>, %arg2: memref<8x1xi32, #tpu.memory_space<vmem>>, %arg3: memref<1x8x128xf32, #tpu.memory_space<vmem>>) attributes {dimension_semantics = [#tpu.dimension_semantics<parallel>], iteration_bounds = array<i64: 1>, scalar_prefetch = 0 : i64, scratch_operands = 0 : i64, tpu.core_type = #tpu.core_type<tc>, window_params = [{transform_indices = @transform_0, window_bounds = array<i64: 8, 128>}, {transform_indices = @transform_1, window_bounds = array<i64: 8, 1>}, {transform_indices = @transform_2, window_bounds = array<i64: 1, 8, 128>}]} {
    %c0 = arith.constant 0 : index
    %c0_0 = arith.constant 0 : index
    %0 = vector.load %arg1[%c0, %c0_0] : memref<8x128xf32, #tpu.memory_space<vmem>>, vector<8x128xf32>
    %c0_1 = arith.constant 0 : index
    %c0_2 = arith.constant 0 : index
    %1 = vector.load %arg2[%c0_1, %c0_2] : memref<8x1xi32, #tpu.memory_space<vmem>>, vector<8x1xi32>
    %cst = arith.constant dense<0xFF800000> : vector<8xf32>
    %2 = vector.multi_reduction <maximumf>, %0, %cst [1] : vector<8x128xf32> to vector<8xf32>
    %3 = vector.shape_cast %2 : vector<8xf32> to vector<8x1xf32>
    %4 = vector.broadcast %3 : vector<8x1xf32> to vector<8x128xf32>
    %5 = arith.subf %0, %4 : vector<8x128xf32>
    %6 = math.exp %5 : vector<8x128xf32>
    %7 = tpu.iota {dimensions = array<i32: 1>} : vector<1x128xi32>
    %8 = vector.broadcast %7 : vector<1x128xi32> to vector<8x128xi32>
    %9 = vector.broadcast %1 : vector<8x1xi32> to vector<8x128xi32>
    %10 = arith.cmpi eq, %8, %9 : vector<8x128xi32>
    %cst_3 = arith.constant 0.000000e+00 : f32
    %11 = vector.broadcast %cst_3 : f32 to vector<8x128xf32>
    %12 = arith.select %10, %5, %11 : vector<8x128xi1>, vector<8x128xf32>
    %cst_4 = arith.constant 1.000000e+00 : f32
    %13 = vector.broadcast %cst_4 : f32 to vector<128x1xf32>
    %cst_5 = arith.constant dense<0.000000e+00> : vector<8x1xf32>
    %14 = tpu.matmul %6, %13, %cst_5 {dimension_numbers = #tpu.dot_dimension_numbers<[1], [0], [0], [1], [0, 0, 1, 1], [], []>} : vector<8x128xf32>, vector<128x1xf32>, vector<8x1xf32> -> vector<8x1xf32>
    %cst_6 = arith.constant dense<0.000000e+00> : vector<8x1xf32>
    %15 = tpu.matmul %12, %13, %cst_6 {dimension_numbers = #tpu.dot_dimension_numbers<[1], [0], [0], [1], [0, 0, 1, 1], [], []>} : vector<8x128xf32>, vector<128x1xf32>, vector<8x1xf32> -> vector<8x1xf32>
    %16 = math.log %14 : vector<8x1xf32>
    %17 = arith.subf %16, %15 : vector<8x1xf32>
    %18 = vector.shape_cast %17 : vector<8x1xf32> to vector<1x8x1xf32>
    %cst_7 = arith.constant dense<0.000000e+00> : vector<1xf32>
    %19 = vector.multi_reduction <add>, %18, %cst_7 [1, 2] : vector<1x8x1xf32> to vector<1xf32>
    %20 = vector.shape_cast %19 : vector<1xf32> to vector<1x1x1xf32>
    %21 = vector.extract %20[0, 0, 0] : f32 from vector<1x1x1xf32>
    %22 = vector.broadcast %21 : f32 to vector<1x8x128xf32>
    %c0_8 = arith.constant 0 : index
    %c0_9 = arith.constant 0 : index
    %c0_10 = arith.constant 0 : index
    %23 = vector.load %arg3[%c0_8, %c0_9, %c0_10] : memref<1x8x128xf32, #tpu.memory_space<vmem>>, vector<1x8x128xf32>
    tpu.vector_store %arg3[%c0_8, %c0_9, %c0_10], %22 {strides = array<i32>} : memref<1x8x128xf32, #tpu.memory_space<vmem>>, vector<1x8x128xf32>,
    return
  }
  func.func @transform_0(%arg0: i32) -> (i32, i32) {
    %c0_i32 = arith.constant 0 : i32
    %c0_i32_0 = arith.constant 0 : i32
    return %arg0, %c0_i32 : i32, i32
  }
  func.func @transform_1(%arg0: i32) -> (i32, i32) {
    %c0_i32 = arith.constant 0 : i32
    %c0_i32_0 = arith.constant 0 : i32
    return %arg0, %c0_i32 : i32, i32
  }
  func.func @transform_2(%arg0: i32) -> (i32, i32, i32) {
    %c0_i32 = arith.constant 0 : i32
    %c0_i32_0 = arith.constant 0 : i32
    %c0_i32_1 = arith.constant 0 : i32
    return %arg0, %c0_i32, %c0_i32_0 : i32, i32, i32
  }
}

</mosaic_0001>

<bundles_post_ra>
// kernel: tpu_custom_call.1
= control target key start
LH: loop header
LB: loop body
LE: loop exit
PB: predicated region body
PF: predicated region fallthrough
CT: control target
= control target key end

     0   :  { %v370_v1 = vmov 0.0|0.0   ;;  %s409_s0 = inlined_call_operand.vmem [shape: f32[8,128], index: 0, kind: input, shape index: {}]   ;;  %s410_s1 = inlined_call_operand.vmem [shape: s32[8,1], index: 1, kind: input, shape index: {}]   ;;  %s411_s2 = inlined_call_operand.hbm [shape: f32[1,8,128], index: 2, kind: output, shape index: {}]  }
   0x1   :  { %v12_v0 = vld [vmem:[%s409_s0] sm:$0xff]  ;;  %317 = vmatprep.subr.bf16.mxu1 %v370_v1 }
   0x2   :  { %14 = vmax.xlane.f32.xlu0 %v12_v0 }
   0x3   :  { %7 = vsyncpa [#allocation3], 0  ;;  %v371_v2 = vmov 0   ;;  %v372_v3 = vmov 1.0|1.0   ;;  %301 = vmatprep.subr.bf16.mxu0 %v370_v1  ;;  %v13_v4 = vld [vmem:[%s410_s1] sm:$0xff]  ;;  %v19_v8 = vlaneseq }
   0x4   :  { %341 = vset.pattern.permute.xlu0 %v371_v2  ;;  %318 = vmatpush3.bf16.msra.mxu1 %v372_v3  ;;  %vm373_vm0 = vmmov 0   ;;  %v374_v5 = vmov 0.0   ;;  %vm169_vm2 = vcmask 7168   ;;  %s375_s1 = smov [#allocation2]  }
   0x5   :  { %319 = vmatprep.subr.bf16.mxu1 %v370_v1  ;;  %302 = vmatpush3.bf16.msra.mxu0 %v372_v3  ;;  %v20_v10 = vand.u32 127, %v19_v8  ;;  %s188_s12 = sshll.u32 %s375_s1, 4  ;;  %s189_s12 = int_to_ptr.vmem [resolvable:$true] %s188_s12 }
   0x6   :  { %303 = vmatprep.subr.bf16.mxu0 %v370_v1  ;;  %298 = vmatprep.mubr.msk.f32.mxu1 %vm373_vm0, %v374_v5  ;;  %s346_s14 = scalar_lea.vmem %s189_s12, 128  ;;  %p351_p1 = scmp.lt.s32.totalorder %s189_s12, %s189_s12 }
   0x7   :  { %263 = vmatprep.mubr.msk.f32.mxu0 %vm373_vm0, %v374_v5  ;;  %p347_p0 = scmp.ne.s32.totalorder %s189_s12, %s346_s14  ;;  %p352_p2 = scmp.lt.s32.totalorder %s346_s14, %s346_s14 }
   0x8   :  { %320 = vmatpush3.bf16.msra.mxu1 %v372_v3 }
   0x9   :  { %321 = vmatprep.subr.bf16.mxu1 %v370_v1  ;;  %304 = vmatpush3.bf16.msra.mxu0 %v372_v3  ;;  %p353_p3 = por %p352_p2, %p351_p1 }
   0xa   :  { %305 = vmatprep.subr.bf16.mxu0 %v370_v1 }
   0xb   :  { %p354_p4 = pnand %p353_p3, %p347_p0 }
   0xc   :  { %322 = vmatpush3.bf16.msra.mxu1 %v372_v3 }
   0xd   :  { %323 = vmatprep.subr.bf16.mxu1 %v370_v1  ;;  %306 = vmatpush3.bf16.msra.mxu0 %v372_v3 }
   0xe   :  { %307 = vmatprep.subr.bf16.mxu0 %v370_v1 }
  0x10   :  { %324 = vmatpush3.bf16.msra.mxu1 %v372_v3 }
  0x11   :  { %325 = vmatprep.subr.bf16.mxu1 %v370_v1  ;;  %308 = vmatpush3.bf16.msra.mxu0 %v372_v3 }
  0x12   :  { %309 = vmatprep.subr.bf16.mxu0 %v370_v1 }
  0x14   :  { %326 = vmatpush3.bf16.msra.mxu1 %v372_v3 }
  0x15   :  { %327 = vmatprep.subr.bf16.mxu1 %v370_v1  ;;  %310 = vmatpush3.bf16.msra.mxu0 %v372_v3 }
  0x16   :  { %311 = vmatprep.subr.bf16.mxu0 %v370_v1 }
  0x18   :  { %328 = vmatpush3.bf16.msra.mxu1 %v372_v3  ;;  %22 = vperm.xlu0 %341, %v13_v4  }
  0x19   :  { %329 = vmatprep.subr.bf16.mxu1 %v370_v1  ;;  %312 = vmatpush3.bf16.msra.mxu0 %v372_v3 }
  0x1a   :  { %313 = vmatprep.subr.bf16.mxu0 %v370_v1 }
  0x1c   :  { %330 = vmatpush3.bf16.msra.mxu1 %v372_v3 }
  0x1d   :  { %331 = vmatprep.subr.bf16.mxu1 %v370_v1  ;;  %314 = vmatpush3.bf16.msra.mxu0 %v372_v3 }
  0x1e   :  { %315 = vmatprep.subr.bf16.mxu0 %v370_v1 }
  0x20   :  { %332 = vmatpush3.bf16.msra.mxu1 %v372_v3 }
  0x21   :  { %316 = vmatpush3.bf16.msra.mxu0 %v372_v3 }
  0x8f   :  { %v15_v6 = vpop.xlane.xlu0 %14 }
  0x90   :  { %v16_v7 = vsub.f32 %v12_v0, %v15_v6 }
  0x92   :  { %v17_v9 = vmul.f32 1.442695, %v16_v7 }
  0x94   :  { %342 = vpow2.f32 %v17_v9 }
  0x97   :  { %v23_v11 = vpop.permute.xlu0 %22 }
  0x98   :  { %vm24_vm1 = vcmp.eq.s32.totalorder %v20_v10, %v23_v11 }
  0x99   :  { %299 = vmatmul.mubr.msk.f32.vlgmr.msra.gmra.mrb[0].mxu1 %vm24_vm1, %v16_v7 }
  0x9e   :  { %v343_v12 = vpop.eup %342 }
  0x9f   :  { %264 = vmatmul.mubr.f32.vlgmr.msra.gmra.mrb[0].mxu0 %v343_v12 }
 0x16c   :  { %v162_v13 = vpop.f32.mrb[0].mxu1 }
 0x16d   :  { %v300_v14 = vpop.f32.mrb[1].mxu1 }
 0x172   :  { %v92_v15 = vpop.f32.mrb[0].mxu0 }
 0x173   :  { %344 = vlog2.f32 %v92_v15  ;;  %v265_v16 = vpop.f32.mrb[1].mxu0 }
 0x17d   :  { %v345_v17 = vpop.eup %344 }
 0x17e   :  { %v167_v18 = vmul.f32 0.6931472, %v345_v17 }
 0x180   :  { %v168_v19 = vsub.f32 %v167_v18, %v162_v13 }
 0x182   :  { %v170_v20 = vsel %vm169_vm2, %v168_v19, 0.0 }
 0x183   :  { %171 = vadd.xlane.f32.xlu1 %v170_v20 }
 0x210   :  { %v172_v21 = vpop.xlane.xlu1 %171 }
 0x211   :  { %v173_v22 = vrot.slane %v172_v21, 4 }
 0x213   :  { %v174_v23 = vadd.f32 %v173_v22, %v172_v21 }
 0x215   :  { %v175_v24 = vrot.slane %v174_v23, 2 }
 0x217   :  { %v176_v25 = vadd.f32 %v175_v24, %v174_v23 }
 0x219   :  { %v177_v26 = vrot.slane %v176_v25, 1 }
 0x21b   :  { %v178_v27 = vadd.f32 %v177_v26, %v176_v25 }
 0x21d   :  { %333 = vpush %v178_v27 }
 0x24e   :  { %s334_s13 = spop %333 }
 0x24f   :  { %v180_v28 = vstv %s334_s13 }
 0x250   :  { %181 = vst [vmem:[#allocation2] sm:$0xff] %v180_v28 }
 0x251   :  { %357 = shalt.err (!%p354_p4)
}
 0x252   :  { %s358_s17 = scalar_lea.hbm %s411_s2, 128 }
 0x253   :  { %p359_p5 = scmp.ne.s32.totalorder %s411_s2, %s358_s17  ;;  %p362_p6 = scmp.lt.u32.totalorder %s358_s17, %s411_s2 }
 0x255   :  { %p364_p7 = pnand %p362_p6, %p359_p5 }
 0x257   :  { %367 = shalt.err (!%p364_p7)
}
 0x258   :  { %191 = dma.vmem_to_hbm [thread:$0]  %s189_s12, 128, %s411_s2, [#allocation3]  }
 0x259   :  { %368 = dma.done.wait [#allocation3], 128  }
 0x25a   :  { %369 = vsyncadd [#allocation3], 4294967168 }
 0x25b   :  { %195 = vsyncpa [#allocation3], 1 }

</bundles_post_ra>
